<compile_context>
chip_gen: v7x
topology: tpu7x:2x2x1
jax: 0.10.0
libtpu: 0.0.40
codegen_flags: <defaults>
</compile_context>

<pallas_src>
import jax
import jax.numpy as jnp
from jax.experimental import pallas as pl
from jax.experimental.pallas import tpu as pltpu

LANE = 128
SUBLANE = 8


def _round_up(x, m):
    return ((x + m - 1) // m) * m


def _policy_kernel(x_ref, w1_ref, b1_ref, w2_ref, b2_ref, wh_ref, bh_ref,
                   lo_ref, hi_ref, out_ref):
    cdt = w1_ref.dtype  # compute dtype for the MXU (bf16), accumulation is f32
    # hidden layer 1: Linear + ReLU
    h = jnp.dot(x_ref[...].astype(cdt), w1_ref[...],
                preferred_element_type=jnp.float32)
    h = jnp.maximum(h + b1_ref[...], 0.0)
    # hidden layer 2: Linear + ReLU
    h = jnp.dot(h.astype(cdt), w2_ref[...],
                preferred_element_type=jnp.float32)
    h = jnp.maximum(h + b2_ref[...], 0.0)
    # fused mean / log_std head: one MXU push, one lane-dense output slab.
    out = jnp.dot(h.astype(cdt), wh_ref[...],
                  preferred_element_type=jnp.float32)
    out = out + bh_ref[...]
    # per-column clamp: mean columns have +/-FLT_MAX bounds (no-op), the
    # log_std columns carry [log_std_min, log_std_max]; padded columns ignored.
    out = jnp.clip(out, lo_ref[...], hi_ref[...])
    out_ref[...] = out.astype(out_ref.dtype)


def prepare_params(params, log_std_min=-20.0, log_std_max=2.0,
                   compute_dtype=jnp.bfloat16):
    """One-time packing of PolicyNetwork weights for the Pallas kernel.

    Fuses the mean/log_std heads into one (H2, 2A) matrix, lane-pads only the
    head's output dim, bakes the log_std clamp into per-column lo/hi vectors,
    and casts the matmul operands to `compute_dtype`.  Call this ONCE per
    parameter set (not per forward)."""
    w1, b1, w2, b2, wm, bm, ws, bs = params
    action_dim = wm.shape[1]
    a2 = 2 * action_dim
    a2_p = _round_up(a2, LANE)
    H2 = w2.shape[1]
    f32 = jnp.float32

    wh = jnp.zeros((H2, a2_p), compute_dtype)
    wh = wh.at[:, :action_dim].set(wm.astype(compute_dtype))
    wh = wh.at[:, action_dim:a2].set(ws.astype(compute_dtype))
    bh = jnp.zeros((1, a2_p), f32)
    bh = bh.at[0, :action_dim].set(bm.astype(f32))
    bh = bh.at[0, action_dim:a2].set(bs.astype(f32))

    big = float(jnp.finfo(jnp.float32).max)
    lo = jnp.full((1, a2_p), -big, f32).at[0, action_dim:a2].set(log_std_min)
    hi = jnp.full((1, a2_p), big, f32).at[0, action_dim:a2].set(log_std_max)

    return dict(
        w1=w1.astype(compute_dtype), b1=b1.astype(f32).reshape(1, -1),
        w2=w2.astype(compute_dtype), b2=b2.astype(f32).reshape(1, -1),
        wh=wh, bh=bh, lo=lo, hi=hi,
        action_dim=action_dim, a2=a2, a2_p=a2_p,
    )


def policy_forward(state, packed):
    """Pallas forward pass. Returns (mean, log_std), each (B, action_dim)."""
    B, state_dim = state.shape
    action_dim, a2, a2_p = packed["action_dim"], packed["a2"], packed["a2_p"]
    w1, b1 = packed["w1"], packed["b1"]
    w2, b2 = packed["w2"], packed["b2"]
    wh, bh = packed["wh"], packed["bh"]
    lo, hi = packed["lo"], packed["hi"]
    H1, H2 = w1.shape[1], w2.shape[1]

    # Batch tile: big tiles (up to ~1024 rows) amortize the per-grid-step
    # overhead; for B > 256 keep >= 2 grid steps so both v7x TensorCores get
    # work via the "parallel" grid axis.  tb is chosen so the batch is padded
    # by at most a tile remainder (never a whole extra tile).
    Bs = _round_up(B, SUBLANE)
    if Bs <= 256:
        tb = Bs
    else:
        n_steps = max(2, pl.cdiv(Bs, 1024))
        tb = _round_up(pl.cdiv(Bs, n_steps), SUBLANE)
    grid_b = pl.cdiv(B, tb)
    b_p = grid_b * tb

    # Pad only the remainder batch rows; no K / lane padding of the activation
    # (block last dim == full state_dim is legal even when < 128).
    x = state
    if b_p != B:
        x = jnp.zeros((b_p, state_dim), state.dtype).at[:B, :].set(state)

    resident = lambda a: pl.BlockSpec(a.shape, lambda i: (0, 0))
    w_item = jnp.dtype(w1.dtype).itemsize
    cost = pl.CostEstimate(
        flops=2 * b_p * (state_dim * H1 + H1 * H2 + H2 * a2_p),
        transcendentals=0,
        bytes_accessed=(b_p * state_dim * x.dtype.itemsize      # activation in
                        + b_p * a2_p * 4                        # output
                        + (state_dim * H1 + H1 * H2 + H2 * a2_p) * w_item
                        + (H1 + H2 + 3 * a2_p) * 4),            # biases/clamps
    )

    # TODO(synk): if hidden_dims are scaled to multi-MB weights, single-buffer
    # the resident weight specs (pipeline_mode=pl.Buffered(1)) and set
    # vmem_limit_bytes explicitly so they fit v7x's 64 MiB VMEM; at these
    # sizes the defaults are correct and fast.
    out = pl.pallas_call(
        _policy_kernel,
        out_shape=jax.ShapeDtypeStruct((b_p, a2_p), jnp.float32),
        grid=(grid_b,),
        in_specs=[
            pl.BlockSpec((tb, state_dim), lambda i: (i, 0)),   # activations: blocked over B
            resident(w1), resident(b1),
            resident(w2), resident(b2),
            resident(wh), resident(bh),
            resident(lo), resident(hi),
        ],
        out_specs=pl.BlockSpec((tb, a2_p), lambda i: (i, 0)),
        compiler_params=pltpu.CompilerParams(
            dimension_semantics=("parallel",),
        ),
        cost_estimate=cost,
    )(x, w1, b1, w2, b2, wh, bh, lo, hi)

    mean = out[:B, :action_dim]
    log_std = out[:B, action_dim:a2]
    return mean, log_std


def init_params(key, state_dim, action_dim, hidden_dims):
    """Deterministic init mimicking PyTorch nn.Linear default (uniform +/- 1/sqrt(fan_in)).
    Weights are stored as (in_features, out_features)."""
    params = []
    dims = [state_dim] + list(hidden_dims)
    keys = jax.random.split(key, 2 * (len(hidden_dims) + 2))
    ki = 0

    def linear(kw, kb, fan_in, fan_out):
        bound = 1.0 / jnp.sqrt(fan_in)
        w = jax.random.uniform(kw, (fan_in, fan_out), jnp.float32, -bound, bound)
        b = jax.random.uniform(kb, (fan_out,), jnp.float32, -bound, bound)
        return w, b

    for i in range(len(hidden_dims)):
        w, b = linear(keys[ki], keys[ki + 1], dims[i], dims[i + 1])
        ki += 2
        params.extend([w, b])
    wm, bm = linear(keys[ki], keys[ki + 1], hidden_dims[-1], action_dim)
    ki += 2
    ws, bs = linear(keys[ki], keys[ki + 1], hidden_dims[-1], action_dim)
    params.extend([wm, bm, ws, bs])
    return tuple(params)


def reference_forward(state, params, log_std_min=-20.0, log_std_max=2.0):
    """Pure f32 reference (matches the PyTorch module)."""
    w1, b1, w2, b2, wm, bm, ws, bs = params
    h = jnp.maximum(state @ w1 + b1, 0.0)
    h = jnp.maximum(h @ w2 + b2, 0.0)
    mean = h @ wm + bm
    log_std = jnp.clip(h @ ws + bs, log_std_min, log_std_max)
    return mean, log_std


def reference_forward_mixed(state, params, log_std_min=-20.0, log_std_max=2.0,
                            compute_dtype=jnp.bfloat16):
    """Reference mirroring the kernel's bf16-operand / f32-accumulate matmuls."""
    w1, b1, w2, b2, wm, bm, ws, bs = params
    c = lambda a: a.astype(compute_dtype)
    h = jnp.dot(c(state), c(w1), preferred_element_type=jnp.float32) + b1
    h = jnp.maximum(h, 0.0)
    h = jnp.dot(c(h), c(w2), preferred_element_type=jnp.float32) + b2
    h = jnp.maximum(h, 0.0)
    mean = jnp.dot(c(h), c(wm), preferred_element_type=jnp.float32) + bm
    log_std = jnp.dot(c(h), c(ws), preferred_element_type=jnp.float32) + bs
    log_std = jnp.clip(log_std, log_std_min, log_std_max)
    return mean, log_std


if __name__ == "__main__":
    key = jax.random.PRNGKey(0)
    k_state, k_params, k_rest = jax.random.split(key, 3)

    # --- Small config consistent with the module: state_dim=16, action_dim=8,
    #     hidden_dims=[32, 32], batch=8 (single-tile path). ---
    B, state_dim, action_dim = 8, 16, 8
    hidden_dims = [32, 32]
    state = jax.random.normal(k_state, (B, state_dim), dtype=jnp.float32)
    params = init_params(k_params, state_dim, action_dim, hidden_dims)
    packed = prepare_params(params)                 # one-time weight prep
    mean, log_std = policy_forward(state, packed)
    jax.block_until_ready(mean)
    jax.block_until_ready(log_std)

    assert mean.shape == (B, action_dim) and log_std.shape == (B, action_dim)
    m_mix, ls_mix = reference_forward_mixed(state, params)
    m_ref, ls_ref = reference_forward(state, params)
    assert jnp.allclose(mean, m_mix, atol=5e-3), "mean mismatch (mixed ref)"
    assert jnp.allclose(log_std, ls_mix, atol=5e-3), "log_std mismatch (mixed ref)"
    assert jnp.allclose(mean, m_ref, atol=5e-2), "mean mismatch (f32 ref)"
    assert jnp.allclose(log_std, ls_ref, atol=5e-2), "log_std mismatch (f32 ref)"

    # --- Default module config ([256, 256] hidden) with an awkward batch size
    #     to exercise the multi-tile grid + remainder-row padding path. ---
    B2 = 260
    hidden_dims2 = [256, 256]
    k_s2, k_p2 = jax.random.split(k_rest)
    state2 = jax.random.normal(k_s2, (B2, state_dim), dtype=jnp.float32)
    params2 = init_params(k_p2, state_dim, action_dim, hidden_dims2)
    packed2 = prepare_params(params2)
    mean2, log_std2 = policy_forward(state2, packed2)
    jax.block_until_ready(mean2)
    jax.block_until_ready(log_std2)

    assert mean2.shape == (B2, action_dim) and log_std2.shape == (B2, action_dim)
    m_mix2, ls_mix2 = reference_forward_mixed(state2, params2)
    m_ref2, ls_ref2 = reference_forward(state2, params2)
    assert jnp.allclose(mean2, m_mix2, atol=5e-3), "mean mismatch (mixed ref, big)"
    assert jnp.allclose(log_std2, ls_mix2, atol=5e-3), "log_std mismatch (mixed ref, big)"
    assert jnp.allclose(mean2, m_ref2, atol=8e-2), "mean mismatch (f32 ref, big)"
    assert jnp.allclose(log_std2, ls_ref2, atol=8e-2), "log_std mismatch (f32 ref, big)"

    # TODO(synk): PolicyNetwork.sample() (Normal.rsample / tanh / log_prob) is a
    # separate method, not part of forward(); it is not implemented here.
    print("KERNEL_OK")
</pallas_src>

<mosaic_0001>
module attributes {stable_mosaic.version = 11 : i64} {
  func.func @_policy_kernel(%arg0: i32, %arg1: memref<8x16xf32, #tpu.memory_space<vmem>>, %arg2: memref<16x32xbf16, #tpu.memory_space<vmem>>, %arg3: memref<1x32xf32, #tpu.memory_space<vmem>>, %arg4: memref<32x32xbf16, #tpu.memory_space<vmem>>, %arg5: memref<1x32xf32, #tpu.memory_space<vmem>>, %arg6: memref<32x128xbf16, #tpu.memory_space<vmem>>, %arg7: memref<1x128xf32, #tpu.memory_space<vmem>>, %arg8: memref<1x128xf32, #tpu.memory_space<vmem>>, %arg9: memref<1x128xf32, #tpu.memory_space<vmem>>, %arg10: memref<8x128xf32, #tpu.memory_space<vmem>>) attributes {dimension_semantics = [#tpu.dimension_semantics<parallel>], iteration_bounds = array<i64: 1>, scalar_prefetch = 0 : i64, scratch_operands = 0 : i64, tpu.core_type = #tpu.core_type<tc>, window_params = [{transform_indices = @transform_0, window_bounds = array<i64: 8, 16>}, {pipeline_mode = #tpu.pipeline_mode<synchronous>, transform_indices = @transform_1, window_bounds = array<i64: 16, 32>}, {pipeline_mode = #tpu.pipeline_mode<synchronous>, transform_indices = @transform_2, window_bounds = array<i64: 1, 32>}, {pipeline_mode = #tpu.pipeline_mode<synchronous>, transform_indices = @transform_3, window_bounds = array<i64: 32, 32>}, {pipeline_mode = #tpu.pipeline_mode<synchronous>, transform_indices = @transform_4, window_bounds = array<i64: 1, 32>}, {pipeline_mode = #tpu.pipeline_mode<synchronous>, transform_indices = @transform_5, window_bounds = array<i64: 32, 128>}, {pipeline_mode = #tpu.pipeline_mode<synchronous>, transform_indices = @transform_6, window_bounds = array<i64: 1, 128>}, {pipeline_mode = #tpu.pipeline_mode<synchronous>, transform_indices = @transform_7, window_bounds = array<i64: 1, 128>}, {pipeline_mode = #tpu.pipeline_mode<synchronous>, transform_indices = @transform_8, window_bounds = array<i64: 1, 128>}, {transform_indices = @transform_9, window_bounds = array<i64: 8, 128>}]} {
    %c0 = arith.constant 0 : index
    %c0_0 = arith.constant 0 : index
    %0 = vector.load %arg1[%c0, %c0_0] : memref<8x16xf32, #tpu.memory_space<vmem>>, vector<8x16xf32>
    %1 = arith.truncf %0 : vector<8x16xf32> to vector<8x16xbf16>
    %c0_1 = arith.constant 0 : index
    %c0_2 = arith.constant 0 : index
    %2 = vector.load %arg2[%c0_1, %c0_2] : memref<16x32xbf16, #tpu.memory_space<vmem>>, vector<16x32xbf16>
    %cst = arith.constant dense<0.000000e+00> : vector<8x32xf32>
    %3 = tpu.matmul %1, %2, %cst {dimension_numbers = #tpu.dot_dimension_numbers<[1], [0], [0], [1], [0, 0, 1, 1], [], []>} : vector<8x16xbf16>, vector<16x32xbf16>, vector<8x32xf32> -> vector<8x32xf32>
    %c0_3 = arith.constant 0 : index
    %c0_4 = arith.constant 0 : index
    %4 = vector.load %arg3[%c0_3, %c0_4] : memref<1x32xf32, #tpu.memory_space<vmem>>, vector<1x32xf32>
    %5 = vector.broadcast %4 : vector<1x32xf32> to vector<8x32xf32>
    %6 = arith.addf %3, %5 : vector<8x32xf32>
    %cst_5 = arith.constant 0.000000e+00 : f32
    %7 = vector.broadcast %cst_5 : f32 to vector<8x32xf32>
    %8 = arith.maximumf %6, %7 : vector<8x32xf32>
    %9 = arith.truncf %8 : vector<8x32xf32> to vector<8x32xbf16>
    %c0_6 = arith.constant 0 : index
    %c0_7 = arith.constant 0 : index
    %10 = vector.load %arg4[%c0_6, %c0_7] : memref<32x32xbf16, #tpu.memory_space<vmem>>, vector<32x32xbf16>
    %cst_8 = arith.constant dense<0.000000e+00> : vector<8x32xf32>
    %11 = tpu.matmul %9, %10, %cst_8 {dimension_numbers = #tpu.dot_dimension_numbers<[1], [0], [0], [1], [0, 0, 1, 1], [], []>} : vector<8x32xbf16>, vector<32x32xbf16>, vector<8x32xf32> -> vector<8x32xf32>
    %c0_9 = arith.constant 0 : index
    %c0_10 = arith.constant 0 : index
    %12 = vector.load %arg5[%c0_9, %c0_10] : memref<1x32xf32, #tpu.memory_space<vmem>>, vector<1x32xf32>
    %13 = vector.broadcast %12 : vector<1x32xf32> to vector<8x32xf32>
    %14 = arith.addf %11, %13 : vector<8x32xf32>
    %cst_11 = arith.constant 0.000000e+00 : f32
    %15 = vector.broadcast %cst_11 : f32 to vector<8x32xf32>
    %16 = arith.maximumf %14, %15 : vector<8x32xf32>
    %17 = arith.truncf %16 : vector<8x32xf32> to vector<8x32xbf16>
    %c0_12 = arith.constant 0 : index
    %c0_13 = arith.constant 0 : index
    %18 = vector.load %arg6[%c0_12, %c0_13] : memref<32x128xbf16, #tpu.memory_space<vmem>>, vector<32x128xbf16>
    %cst_14 = arith.constant dense<0.000000e+00> : vector<8x128xf32>
    %19 = tpu.matmul %17, %18, %cst_14 {dimension_numbers = #tpu.dot_dimension_numbers<[1], [0], [0], [1], [0, 0, 1, 1], [], []>} : vector<8x32xbf16>, vector<32x128xbf16>, vector<8x128xf32> -> vector<8x128xf32>
    %c0_15 = arith.constant 0 : index
    %c0_16 = arith.constant 0 : index
    %20 = vector.load %arg7[%c0_15, %c0_16] : memref<1x128xf32, #tpu.memory_space<vmem>>, vector<1x128xf32>
    %21 = vector.broadcast %20 : vector<1x128xf32> to vector<8x128xf32>
    %22 = arith.addf %19, %21 : vector<8x128xf32>
    %c0_17 = arith.constant 0 : index
    %c0_18 = arith.constant 0 : index
    %23 = vector.load %arg8[%c0_17, %c0_18] : memref<1x128xf32, #tpu.memory_space<vmem>>, vector<1x128xf32>
    %c0_19 = arith.constant 0 : index
    %c0_20 = arith.constant 0 : index
    %24 = vector.load %arg9[%c0_19, %c0_20] : memref<1x128xf32, #tpu.memory_space<vmem>>, vector<1x128xf32>
    %25 = vector.broadcast %23 : vector<1x128xf32> to vector<8x128xf32>
    %26 = arith.maximumf %25, %22 : vector<8x128xf32>
    %27 = vector.broadcast %24 : vector<1x128xf32> to vector<8x128xf32>
    %28 = arith.minimumf %27, %26 : vector<8x128xf32>
    %c0_21 = arith.constant 0 : index
    %c0_22 = arith.constant 0 : index
    %29 = vector.load %arg10[%c0_21, %c0_22] : memref<8x128xf32, #tpu.memory_space<vmem>>, vector<8x128xf32>
    tpu.vector_store %arg10[%c0_21, %c0_22], %28 {strides = array<i32>} : memref<8x128xf32, #tpu.memory_space<vmem>>, vector<8x128xf32>,
    return
  }
  func.func @transform_0(%arg0: i32) -> (i32, i32) {
    %c0_i32 = arith.constant 0 : i32
    %c0_i32_0 = arith.constant 0 : i32
    return %arg0, %c0_i32 : i32, i32
  }
  func.func @transform_1(%arg0: i32) -> (i32, i32) {
    %c0_i32 = arith.constant 0 : i32
    %c0_i32_0 = arith.constant 0 : i32
    %c0_i32_1 = arith.constant 0 : i32
    return %c0_i32, %c0_i32_0 : i32, i32
  }
  func.func @transform_2(%arg0: i32) -> (i32, i32) {
    %c0_i32 = arith.constant 0 : i32
    %c0_i32_0 = arith.constant 0 : i32
    %c0_i32_1 = arith.constant 0 : i32
    return %c0_i32, %c0_i32_0 : i32, i32
  }
  func.func @transform_3(%arg0: i32) -> (i32, i32) {
    %c0_i32 = arith.constant 0 : i32
    %c0_i32_0 = arith.constant 0 : i32
    %c0_i32_1 = arith.constant 0 : i32
    return %c0_i32, %c0_i32_0 : i32, i32
  }
  func.func @transform_4(%arg0: i32) -> (i32, i32) {
    %c0_i32 = arith.constant 0 : i32
    %c0_i32_0 = arith.constant 0 : i32
    %c0_i32_1 = arith.constant 0 : i32
    return %c0_i32, %c0_i32_0 : i32, i32
  }
  func.func @transform_5(%arg0: i32) -> (i32, i32) {
    %c0_i32 = arith.constant 0 : i32
    %c0_i32_0 = arith.constant 0 : i32
    %c0_i32_1 = arith.constant 0 : i32
    return %c0_i32, %c0_i32_0 : i32, i32
  }
  func.func @transform_6(%arg0: i32) -> (i32, i32) {
    %c0_i32 = arith.constant 0 : i32
    %c0_i32_0 = arith.constant 0 : i32
    %c0_i32_1 = arith.constant 0 : i32
    return %c0_i32, %c0_i32_0 : i32, i32
  }
  func.func @transform_7(%arg0: i32) -> (i32, i32) {
    %c0_i32 = arith.constant 0 : i32
    %c0_i32_0 = arith.constant 0 : i32
    %c0_i32_1 = arith.constant 0 : i32
    return %c0_i32, %c0_i32_0 : i32, i32
  }
  func.func @transform_8(%arg0: i32) -> (i32, i32) {
    %c0_i32 = arith.constant 0 : i32
    %c0_i32_0 = arith.constant 0 : i32
    %c0_i32_1 = arith.constant 0 : i32
    return %c0_i32, %c0_i32_0 : i32, i32
  }
  func.func @transform_9(%arg0: i32) -> (i32, i32) {
    %c0_i32 = arith.constant 0 : i32
    %c0_i32_0 = arith.constant 0 : i32
    return %arg0, %c0_i32 : i32, i32
  }
}

</mosaic_0001>

<bundles_post_ra>
// kernel: tpu_custom_call.1
= control target key start
LH: loop header
LB: loop body
LE: loop exit
PB: predicated region body
PF: predicated region fallthrough
CT: control target
= control target key end

     0   :  { %14 = vsyncpa [#allocation3], 0  ;;  %s587_s0 = inlined_call_operand.hbm [shape: f32[8,16], index: 0, kind: input, shape index: {}]   ;;  %s588_s1 = inlined_call_operand.hbm [shape: bf16[16,32], index: 1, kind: input, shape index: {}]   ;;  %s589_s2 = inlined_call_operand.vmem [shape: f32[1,32], index: 2, kind: input, shape index: {}]   ;;  %s590_s3 = inlined_call_operand.hbm [shape: bf16[32,32], index: 3, kind: input, shape index: {}]   ;;  %s591_s4 = inlined_call_operand.vmem [shape: f32[1,32], index: 4, kind: input, shape index: {}]   ;;  %s592_s5 = inlined_call_operand.vmem [shape: bf16[32,128], index: 5, kind: input, shape index: {}]   ;;  %s593_s6 = inlined_call_operand.vmem [shape: f32[1,128], index: 6, kind: input, shape index: {}]   ;;  %s594_s7 = inlined_call_operand.vmem [shape: f32[1,128], index: 7, kind: input, shape index: {}]   ;;  %s595_s8 = inlined_call_operand.vmem [shape: f32[1,128], index: 8, kind: input, shape index: {}]   ;;  %s596_s9 = inlined_call_operand.hbm [shape: f32[8,128], index: 9, kind: output, shape index: {}]  }
   0x1   :  { %15 = vsyncpa [#allocation6], 0 }
   0x2   :  { %16 = vsyncpa [#allocation4], 0  ;;  %s454_s30 = smov [#allocation5]   ;;  %s360_s13 = scalar_lea.hbm %s588_s1, 128 }
   0x3   :  { %s32_s10 = sshll.u32 %s454_s30, 4  ;;  %p361_p0 = scmp.ne.s32.totalorder %s588_s1, %s360_s13  ;;  %s33_s10 = int_to_ptr.vmem [resolvable:$true] %s32_s10 }
   0x4   :  { %p364_p1 = scmp.lt.u32.totalorder %s360_s13, %s588_s1 }
   0x6   :  { %p366_p2 = pnand %p364_p1, %p361_p0 }
   0x8   :  { %369 = shalt.err (!%p366_p2)
}
   0x9   :  { %s370_s18 = scalar_lea.vmem %s33_s10, 128  ;;  %p375_p4 = scmp.lt.s32.totalorder %s33_s10, %s33_s10 }
   0xa   :  { %p371_p3 = scmp.ne.s32.totalorder %s33_s10, %s370_s18  ;;  %p376_p5 = scmp.lt.s32.totalorder %s370_s18, %s370_s18 }
   0xc   :  { %p377_p6 = por %p376_p5, %p375_p4 }
   0xe   :  { %p378_p7 = pnand %p377_p6, %p371_p3 }
  0x10   :  { %381 = shalt.err (!%p378_p7)
}
  0x11   :  { %s455_s19 = smov 64   ;;  %s456_s20 = smov 4  }
  0x12   :  { %38 = dma.hbm_to_vmem [thread:$0]  %s588_s1, 128, %s33_s10, [#allocation6], %s455_s19, %s455_s19, %s456_s20  }
  0x13   :  { %s457_s23 = smov [#allocation2]   ;;  %s458_s25 = smov [#allocation7]  }
  0x14   :  { %s23_s24 = sshll.u32 %s457_s23, 4  ;;  %s46_s26 = sshll.u32 %s458_s25, 4  ;;  %s24_s24 = int_to_ptr.vmem [resolvable:$true] %s23_s24  ;;  %s47_s26 = int_to_ptr.vmem [resolvable:$true] %s46_s26 }
  0x15   :  { %s382_s29 = scalar_lea.hbm %s587_s0, 128 }
  0x16   :  { %p383_p8 = scmp.ne.s32.totalorder %s587_s0, %s382_s29  ;;  %p386_p9 = scmp.lt.u32.totalorder %s382_s29, %s587_s0 }
  0x18   :  { %p388_p10 = pnand %p386_p9, %p383_p8 }
  0x1a   :  { %391 = shalt.err (!%p388_p10)
}
  0x1b   :  { %s392_s1 = scalar_lea.vmem %s24_s24, 128  ;;  %p397_p12 = scmp.lt.s32.totalorder %s24_s24, %s24_s24 }
  0x1c   :  { %p393_p11 = scmp.ne.s32.totalorder %s24_s24, %s392_s1  ;;  %p398_p13 = scmp.lt.s32.totalorder %s392_s1, %s392_s1 }
  0x1e   :  { %p399_p0 = por %p398_p13, %p397_p12 }
  0x20   :  { %p400_p1 = pnand %p399_p0, %p393_p11 }
  0x22   :  { %403 = shalt.err (!%p400_p1)
}
  0x23   :  { %26 = dma.hbm_to_vmem [thread:$0]  %s587_s0, 128, %s24_s24, [#allocation3]  }
  0x24   :  { %s404_s17 = scalar_lea.hbm %s590_s3, 256 }
  0x25   :  { %p405_p2 = scmp.ne.s32.totalorder %s590_s3, %s404_s17  ;;  %p408_p3 = scmp.lt.u32.totalorder %s404_s17, %s590_s3 }
  0x27   :  { %p410_p4 = pnand %p408_p3, %p405_p2 }
  0x29   :  { %413 = shalt.err (!%p410_p4)
}
  0x2a   :  { %s414_s25 = scalar_lea.vmem %s47_s26, 256  ;;  %p419_p6 = scmp.lt.s32.totalorder %s47_s26, %s47_s26 }
  0x2b   :  { %p415_p5 = scmp.ne.s32.totalorder %s47_s26, %s414_s25  ;;  %p420_p7 = scmp.lt.s32.totalorder %s414_s25, %s414_s25 }
  0x2d   :  { %p421_p8 = por %p420_p7, %p419_p6 }
  0x2f   :  { %p422_p9 = pnand %p421_p8, %p415_p5 }
  0x31   :  { %425 = shalt.err (!%p422_p9)
}
  0x32   :  { %52 = dma.hbm_to_vmem [thread:$0]  %s590_s3, 256, %s47_s26, [#allocation6], %s455_s19, %s455_s19, %s456_s20  }
  0x33   :  { %448 = dma.done.wait [#allocation3], 128  }
  0x34   :  { %449 = vsyncadd [#allocation3], 4294967168 }
  0x35   :  { %450 = dma.done.wait [#allocation6], 384  }
  0x36   :  { %451 = vsyncadd [#allocation6], 4294966912  ;;  %v459_v0 = vmov 0.0   ;;  %vm460_vm0 = vmmov 0   ;;  %v355_v1 = vld [vmem:[#allocation5] sm:$0xff]   ;;  %v73_v2 = vld [vmem:[#allocation2] sm:$0xff] }
  0x37   :  { %325 = vmatprep.subr.bf16.mxu0 %v459_v0  ;;  %327 = vmatprep.mubr.msk.bf16.mxu0 %vm460_vm0, %v459_v0  ;;  %vm90_vm1 = vcmask 130048   ;;  %v74_v3 = vpack.c.bf16 %v73_v2, %v73_v2  ;;  %v356_v4 = vld [vmem:[#allocation7] sm:$0xff]   ;;  %v357_v5 = vld [vmem:[#allocation7 + $0x8] sm:$0xff]   ;;  %vm159_vm2 = vcmask 261120   ;;  %s461_s1 = smov [#allocation8]  }
  0x38   :  { %331 = vmatprep.subr.bf16.mxu1 %v459_v0  ;;  %335 = vmatprep.mubr.msk.bf16.mxu1 %vm460_vm0, %v459_v0  ;;  %v358_v6 = vld [vmem:[%s592_s5] sm:$0xff]   ;;  %v359_v15 = vld [vmem:[%s592_s5 + $0x8] sm:$0xff]   ;;  %s294_s10 = sshll.u32 %s461_s1, 4  ;;  %s295_s10 = int_to_ptr.vmem [resolvable:$true] %s294_s10 }
  0x39   :  { %326 = vmatpush3.bf16.msra.mxu0 %v355_v1  ;;  %332 = vmatpush3.bf16.msra.mxu1 %v356_v4  ;;  %v304_v7 = vld [vmem:[%s589_s2] ss:$0 sm:$0xff]  ;;  %p431_p11 = scmp.lt.s32.totalorder %s295_s10, %s295_s10 }
  0x3a   :  { %339 = vmatprep.subr.bf16.mxu0 %v459_v0  ;;  %333 = vmatprep.subr.bf16.mxu1 %v459_v0  ;;  %v307_v16 = vld [vmem:[%s591_s4] ss:$0 sm:$0xff] }
  0x3b   :  { %v311_v24 = vld [vmem:[%s593_s6] ss:$0 sm:$0xff]  ;;  %s426_s6 = scalar_lea.vmem %s295_s10, 128 }
  0x3c   :  { %328 = vmatmul.mubr.msk.bf16.vlgmr.msra.gmra.mrb[0].mxu0 %vm90_vm1, %v74_v3  ;;  %v315_v26 = vld [vmem:[%s594_s7] ss:$0 sm:$0xff]  ;;  %p427_p10 = scmp.ne.s32.totalorder %s295_s10, %s426_s6  ;;  %p432_p12 = scmp.lt.s32.totalorder %s426_s6, %s426_s6 }
  0x3d   :  { %343 = vmatprep.mubr.msk.bf16.mxu0 %vm460_vm0, %v459_v0  ;;  %334 = vmatpush3.bf16.msra.mxu1 %v357_v5  ;;  %v316_v30 = vld [vmem:[%s595_s8] ss:$0 sm:$0xff] }
  0x3e   :  { %340 = vmatpush3.bf16.msra.mxu0 %v358_v6  ;;  %p433_p13 = por %p432_p12, %p431_p11 }
  0x3f   :  { %341 = vmatprep.subr.bf16.mxu0 %v459_v0 }
  0x40   :  { %p434_p0 = pnand %p433_p13, %p427_p10 }
  0x42   :  { %342 = vmatpush3.bf16.msra.mxu0 %v359_v15 }
 0x10f   :  { %v128_v8 = vpop.f32.mrb[0].mxu0 }
 0x110   :  { %v129_v9 = vadd.f32 %v304_v7, %v128_v8  ;;  %v329_v10 = vpop.f32.mrb[1].mxu0 }
 0x111   :  { %v131_v11 = vpop.f32.mrb[2].mxu0 }
 0x112   :  { %v134_v12 = vmax.f32 %v129_v9, 0.0  ;;  %v330_v13 = vpop.f32.mrb[3].mxu0 }
 0x114   :  { %v135_v14 = vpack.c.bf16 %v134_v12, %v134_v12 }
 0x116   :  { %336 = vmatmul.mubr.msk.bf16.vlgmr.msra.gmra.mrb[0].mxu1 %vm159_vm2, %v135_v14 }
 0x1e9   :  { %v197_v17 = vpop.f32.mrb[0].mxu1 }
 0x1ea   :  { %v198_v18 = vadd.f32 %v307_v16, %v197_v17  ;;  %v337_v19 = vpop.f32.mrb[1].mxu1 }
 0x1eb   :  { %v200_v20 = vpop.f32.mrb[2].mxu1 }
 0x1ec   :  { %v203_v21 = vmax.f32 %v198_v18, 0.0  ;;  %v338_v22 = vpop.f32.mrb[3].mxu1 }
 0x1ee   :  { %v204_v23 = vpack.c.bf16 %v203_v21, %v203_v21 }
 0x1f0   :  { %344 = vmatmul.mubr.msk.bf16.vlgmr.msra.gmra.mrb[4].mxu0 %vm159_vm2, %v204_v23 }
 0x2c3   :  { %v265_v25 = vpop.f32.mrb[4].mxu0 }
 0x2c4   :  { %v266_v27 = vadd.f32 %v311_v24, %v265_v25  ;;  %v345_v28 = vpop.f32.mrb[5].mxu0 }
 0x2c5   :  { %v268_v29 = vpop.f32.mrb[6].mxu0 }
 0x2c6   :  { %v279_v31 = vmax.f32 %v315_v26, %v266_v27  ;;  %v346_v32 = vpop.f32.mrb[7].mxu0 }
 0x2c8   :  { %v286_v33 = vmin.f32 %v316_v30, %v279_v31 }
 0x2ca   :  { %287 = vst [vmem:[#allocation8] sm:$0xff] %v286_v33 }
 0x2cb   :  { %437 = shalt.err (!%p434_p0)
}
 0x2cc   :  { %s438_s15 = scalar_lea.hbm %s596_s9, 128 }
 0x2cd   :  { %p439_p1 = scmp.ne.s32.totalorder %s596_s9, %s438_s15  ;;  %p442_p2 = scmp.lt.u32.totalorder %s438_s15, %s596_s9 }
 0x2cf   :  { %p444_p3 = pnand %p442_p2, %p439_p1 }
 0x2d1   :  { %447 = shalt.err (!%p444_p3)
}
 0x2d2   :  { %297 = dma.vmem_to_hbm [thread:$0]  %s295_s10, 128, %s596_s9, [#allocation4]  }
 0x2d3   :  { %452 = dma.done.wait [#allocation4], 128  }
 0x2d4   :  { %453 = vsyncadd [#allocation4], 4294967168 }
 0x2d5   :  { %301 = vsyncpa [#allocation3], 1 }
 0x2d6   :  { %302 = vsyncpa [#allocation6], 1 }
 0x2d7   :  { %303 = vsyncpa [#allocation4], 1 }

</bundles_post_ra>
